<compile_context>
chip_gen: v7x
topology: tpu7x:2x2x1
jax: 0.10.0
libtpu: 0.0.40
codegen_flags: <defaults>
</compile_context>

<pallas_src>
import functools
import math

import jax
import jax.numpy as jnp
from jax.experimental import pallas as pl
from jax.experimental.pallas import tpu as pltpu


def _round_up(x, m):
    return (x + m - 1) // m * m


def build_q_kernel(s_ref, q_ref, *, sign, transpose, n):
    """Q = I + S + S^2/2! + ... + S^9/9!, with the sign flip baked in.

    s_ref: (NP, NP) float32 block-diagonal (or zero-padded) skew-symmetric S.
    q_ref: (NP, NP) output in the compute dtype (e.g. bf16).
    """
    S = s_ref[...]
    np_ = S.shape[0]

    Q = jnp.eye(np_, dtype=jnp.float32) + S
    T = S
    for i in range(2, 10):
        # multiply by reciprocal instead of divide (VPU mul cheaper than div)
        T = jnp.dot(T, S, preferred_element_type=jnp.float32) * (1.0 / i)
        Q = Q + T

    if sign == -1:
        # Block-diagonal packing: negate the first row/col of EVERY n x n block.
        axis = 1 if transpose else 0
        idx = jax.lax.broadcasted_iota(jnp.int32, Q.shape, axis)
        Q = jnp.where((idx % n) == 0, -Q, Q)

    q_ref[...] = Q.astype(q_ref.dtype)


def stream_matmul_kernel(x_ref, q_ref, o_ref):
    """One (TM, NP) tile of X times the resident (NP, NP) Q."""
    o_ref[...] = jnp.dot(
        x_ref[...], q_ref[...], preferred_element_type=jnp.float32
    ).astype(o_ref.dtype)


@functools.partial(jax.jit, static_argnames=("n", "sign", "transpose"))
def matrix_exp_forward(x, s_flat, *, n, sign=1, transpose=False):
    """forward(X) = X @ weight, weight = sign-adjusted 9-term exp(S)."""
    dtype = x.dtype

    # ---- choose the packed feature width NP -------------------------------------
    lcm = n * 128 // math.gcd(n, 128)
    if lcm <= 512:
        NP = lcm                    # fully dense block-diagonal packing
    elif n % 128 == 0:
        NP = n                      # already lane-dense, use as-is
    else:
        NP = _round_up(n, 128)      # rare fallback: zero-pad the feature dim
    packed = (NP % n == 0)
    R = NP // n if packed else 1

    # ---- glue: flat strict-upper-triangle -> skew-symmetric S, packed, f32 ------
    rows, cols = jnp.triu_indices(n, k=1)
    S = jnp.zeros((n, n), jnp.float32).at[rows, cols].set(s_flat.astype(jnp.float32))
    S = S - S.T
    if packed:
        S_big = jnp.kron(jnp.eye(R, dtype=jnp.float32), S) if R > 1 else S
    else:
        S_big = jnp.zeros((NP, NP), jnp.float32).at[:n, :n].set(S)

    # ---- build Q once (tiny single-program kernel) -------------------------------
    vmem = pl.BlockSpec(memory_space=pltpu.MemorySpace.VMEM)
    Q = pl.pallas_call(
        functools.partial(build_q_kernel, sign=sign, transpose=transpose, n=n),
        out_shape=jax.ShapeDtypeStruct((NP, NP), dtype),
        in_specs=[vmem],
        out_specs=vmem,
    )(S_big)

    # ---- present X as lane-dense (Mp, NP) rows (free reshape on common path) ----
    lead_shape = x.shape[:-1]
    M = 1
    for d in lead_shape:
        M *= d
    total = M * n

    if packed:
        pad_elems = (-total) % NP
        x_flat = x.reshape(total)
        if pad_elems:
            x_flat = jnp.concatenate([x_flat, jnp.zeros((pad_elems,), dtype)])
        x2d = x_flat.reshape(-1, NP)
    else:
        pad_elems = 0
        x2d = jnp.zeros((M, NP), dtype).at[:, :n].set(x.reshape(M, n))
    Mp = x2d.shape[0]

    # ---- row-tile selection: ~2 MiB blocks, balanced, even grid when possible ---
    itemsize = jnp.dtype(dtype).itemsize
    tm_cap = max(8, ((2 * 1024 * 1024) // (NP * itemsize)) // 8 * 8)
    if Mp <= 8:
        TM = Mp                                   # single block == full array dims
    else:
        n_tiles = pl.cdiv(Mp, tm_cap)
        if n_tiles == 1 and Mp >= 16:
            n_tiles = 2                           # let v7x megacore use both TCs
        if n_tiles > 1 and n_tiles % 2 == 1:
            n_tiles += 1                          # prefer an even, balanced grid
        TM = _round_up(pl.cdiv(Mp, n_tiles), 8)
        TM = min(TM, (Mp // 8) * 8)               # never exceed array; ragged tail ok
    grid_m = pl.cdiv(Mp, TM)

    # ---- streaming X @ Q ---------------------------------------------------------
    out2d = pl.pallas_call(
        stream_matmul_kernel,
        out_shape=jax.ShapeDtypeStruct((Mp, NP), dtype),
        grid=(grid_m,),
        in_specs=[
            pl.BlockSpec((TM, NP), lambda i: (i, 0)),   # streamed X tiles
            pl.BlockSpec((NP, NP), lambda i: (0, 0)),   # Q resident across grid
        ],
        out_specs=pl.BlockSpec((TM, NP), lambda i: (i, 0)),
        compiler_params=pltpu.CompilerParams(
            dimension_semantics=("parallel",),  # megacore split on v7x
        ),
    )(x2d, Q)

    if packed:
        out_flat = out2d.reshape(-1)
        if pad_elems:
            out_flat = out_flat[:total]
        return out_flat.reshape(*lead_shape, n)
    return out2d[:, :n].reshape(*lead_shape, n)


def reference_forward(x, s_flat, n, sign=1, transpose=False):
    """Pure-JAX reference matching the PyTorch forward (f32 Taylor build,
    operands rounded to x.dtype for the final matmul, f32 accumulation)."""
    rows, cols = jnp.triu_indices(n, k=1)
    S = jnp.zeros((n, n), jnp.float32).at[rows, cols].set(s_flat.astype(jnp.float32))
    S = S - S.T
    Q = jnp.eye(n, dtype=jnp.float32) + S
    T = S
    for i in range(2, 10):
        T = (T @ S) / float(i)
        Q = Q + T
    if sign == -1:
        if transpose:
            Q = Q.at[:, 0].set(-Q[:, 0])
        else:
            Q = Q.at[0].set(-Q[0])
    Qh = Q.astype(x.dtype).astype(jnp.float32)
    Xh = x.astype(jnp.float32)
    return (Xh @ Qh).astype(x.dtype)


if __name__ == "__main__":
    key = jax.random.PRNGKey(0)
    k_s, k_x1, k_x2 = jax.random.split(key, 3)

    n = 32                           # square weight dimension
    dtype = jnp.bfloat16             # TPU-native stand-in for torch.float16
    n_tri = n * (n - 1) // 2
    s_flat = (0.05 * jax.random.normal(k_s, (n_tri,), jnp.float32)).astype(dtype)

    # Clean packed path (M*n divisible by 128) and a ragged-tail / ragged-grid path.
    x1 = jax.random.normal(k_x1, (2, 4, n), jnp.float32).astype(dtype)
    x2 = jax.random.normal(k_x2, (5, 9, n), jnp.float32).astype(dtype)

    for x in (x1, x2):
        for sign, transpose in [(1, False), (-1, False), (-1, True)]:
            out = matrix_exp_forward(x, s_flat, n=n, sign=sign, transpose=transpose)
            out = jax.block_until_ready(out)
            ref = reference_forward(x, s_flat, n, sign=sign, transpose=transpose)
            assert out.shape == x.shape and out.dtype == dtype
            ref32 = ref.astype(jnp.float32)
            diff = float(jnp.max(jnp.abs(out.astype(jnp.float32) - ref32)))
            tol = 2.5e-2 * (1.0 + float(jnp.max(jnp.abs(ref32))))
            assert diff <= tol, (
                f"shape={x.shape} sign={sign} transpose={transpose}: "
                f"max abs err {diff} > tol {tol}"
            )

    print("KERNEL_OK")
</pallas_src>

<mosaic_0001>
module attributes {stable_mosaic.version = 11 : i64} {
  func.func private @main(%arg0: i32) attributes {dimension_semantics = [#tpu.dimension_semantics<core_parallel>], iteration_bounds = array<i64: 2>, tpu.core_type = #tpu.core_type<sc_scalar_subcore>, window_params = []} {
    return
  }
}

module attributes {stable_mosaic.version = 11 : i64} {
  func.func private @main(%arg0: i32) attributes {dimension_semantics = [#tpu.dimension_semantics<core_parallel>], iteration_bounds = array<i64: 2>, tpu.core_type = #tpu.core_type<sc_scalar_subcore>, window_params = []} {
    return
  }
}

module attributes {stable_mosaic.version = 11 : i64} {
  func.func @stream_matmul_kernel(%arg0: i32, %arg1: memref<2x128xbf16, #tpu.memory_space<vmem>>, %arg2: memref<128x128xbf16, #tpu.memory_space<vmem>>, %arg3: memref<2x128xbf16, #tpu.memory_space<vmem>>) attributes {dimension_semantics = [#tpu.dimension_semantics<parallel>], iteration_bounds = array<i64: 1>, scalar_prefetch = 0 : i64, scratch_operands = 0 : i64, tpu.core_type = #tpu.core_type<tc>, window_params = [{transform_indices = @transform_0, window_bounds = array<i64: 2, 128>}, {pipeline_mode = #tpu.pipeline_mode<synchronous>, transform_indices = @transform_1, window_bounds = array<i64: 128, 128>}, {transform_indices = @transform_2, window_bounds = array<i64: 2, 128>}]} {
    %c0 = arith.constant 0 : index
    %c0_0 = arith.constant 0 : index
    %0 = vector.load %arg1[%c0, %c0_0] : memref<2x128xbf16, #tpu.memory_space<vmem>>, vector<2x128xbf16>
    %c0_1 = arith.constant 0 : index
    %c0_2 = arith.constant 0 : index
    %1 = vector.load %arg2[%c0_1, %c0_2] : memref<128x128xbf16, #tpu.memory_space<vmem>>, vector<128x128xbf16>
    %cst = arith.constant dense<0.000000e+00> : vector<2x128xf32>
    %2 = tpu.matmul %0, %1, %cst {dimension_numbers = #tpu.dot_dimension_numbers<[1], [0], [0], [1], [0, 0, 1, 1], [], []>} : vector<2x128xbf16>, vector<128x128xbf16>, vector<2x128xf32> -> vector<2x128xf32>
    %3 = arith.truncf %2 : vector<2x128xf32> to vector<2x128xbf16>
    %c0_3 = arith.constant 0 : index
    %c0_4 = arith.constant 0 : index
    %4 = vector.load %arg3[%c0_3, %c0_4] : memref<2x128xbf16, #tpu.memory_space<vmem>>, vector<2x128xbf16>
    tpu.vector_store %arg3[%c0_3, %c0_4], %3 {strides = array<i32>} : memref<2x128xbf16, #tpu.memory_space<vmem>>, vector<2x128xbf16>,
    return
  }
  func.func @transform_0(%arg0: i32) -> (i32, i32) {
    %c0_i32 = arith.constant 0 : i32
    %c0_i32_0 = arith.constant 0 : i32
    return %arg0, %c0_i32 : i32, i32
  }
  func.func @transform_1(%arg0: i32) -> (i32, i32) {
    %c0_i32 = arith.constant 0 : i32
    %c0_i32_0 = arith.constant 0 : i32
    %c0_i32_1 = arith.constant 0 : i32
    return %c0_i32, %c0_i32_0 : i32, i32
  }
  func.func @transform_2(%arg0: i32) -> (i32, i32) {
    %c0_i32 = arith.constant 0 : i32
    %c0_i32_0 = arith.constant 0 : i32
    return %arg0, %c0_i32 : i32, i32
  }
}

module attributes {stable_mosaic.version = 11 : i64} {
  func.func @build_q_kernel(%arg0: memref<128x128xf32, #tpu.memory_space<vmem>>, %arg1: memref<128x128xbf16, #tpu.memory_space<vmem>>) attributes {dimension_semantics = [], scalar_prefetch = 0 : i64, scratch_operands = 0 : i64, tpu.core_type = #tpu.core_type<tc>} {
    %c0 = arith.constant 0 : index
    %c0_0 = arith.constant 0 : index
    %0 = vector.load %arg0[%c0, %c0_0] : memref<128x128xf32, #tpu.memory_space<vmem>>, vector<128x128xf32>
    %1 = tpu.iota {dimensions = array<i32: 0>} : vector<128x128xi32>
    %2 = tpu.iota {dimensions = array<i32: 1>} : vector<128x128xi32>
    %c0_i32 = arith.constant 0 : i32
    %3 = vector.broadcast %c0_i32 : i32 to vector<128x128xi32>
    %4 = arith.addi %1, %3 : vector<128x128xi32>
    %5 = arith.cmpi eq, %4, %2 : vector<128x128xi32>
    %6 = arith.extui %5 : vector<128x128xi1> to vector<128x128xi32>
    %7 = arith.sitofp %6 : vector<128x128xi32> to vector<128x128xf32>
    %8 = arith.addf %7, %0 : vector<128x128xf32>
    %cst = arith.constant dense<0.000000e+00> : vector<128x128xf32>
    %9 = tpu.matmul %0, %0, %cst {dimension_numbers = #tpu.dot_dimension_numbers<[1], [0], [0], [1], [0, 0, 1, 1], [], []>} : vector<128x128xf32>, vector<128x128xf32>, vector<128x128xf32> -> vector<128x128xf32>
    %cst_1 = arith.constant 5.000000e-01 : f32
    %10 = vector.broadcast %cst_1 : f32 to vector<128x128xf32>
    %11 = arith.mulf %9, %10 : vector<128x128xf32>
    %12 = arith.addf %8, %11 : vector<128x128xf32>
    %cst_2 = arith.constant dense<0.000000e+00> : vector<128x128xf32>
    %13 = tpu.matmul %11, %0, %cst_2 {dimension_numbers = #tpu.dot_dimension_numbers<[1], [0], [0], [1], [0, 0, 1, 1], [], []>} : vector<128x128xf32>, vector<128x128xf32>, vector<128x128xf32> -> vector<128x128xf32>
    %cst_3 = arith.constant 0.333333343 : f32
    %14 = vector.broadcast %cst_3 : f32 to vector<128x128xf32>
    %15 = arith.mulf %13, %14 : vector<128x128xf32>
    %16 = arith.addf %12, %15 : vector<128x128xf32>
    %cst_4 = arith.constant dense<0.000000e+00> : vector<128x128xf32>
    %17 = tpu.matmul %15, %0, %cst_4 {dimension_numbers = #tpu.dot_dimension_numbers<[1], [0], [0], [1], [0, 0, 1, 1], [], []>} : vector<128x128xf32>, vector<128x128xf32>, vector<128x128xf32> -> vector<128x128xf32>
    %cst_5 = arith.constant 2.500000e-01 : f32
    %18 = vector.broadcast %cst_5 : f32 to vector<128x128xf32>
    %19 = arith.mulf %17, %18 : vector<128x128xf32>
    %20 = arith.addf %16, %19 : vector<128x128xf32>
    %cst_6 = arith.constant dense<0.000000e+00> : vector<128x128xf32>
    %21 = tpu.matmul %19, %0, %cst_6 {dimension_numbers = #tpu.dot_dimension_numbers<[1], [0], [0], [1], [0, 0, 1, 1], [], []>} : vector<128x128xf32>, vector<128x128xf32>, vector<128x128xf32> -> vector<128x128xf32>
    %cst_7 = arith.constant 2.000000e-01 : f32
    %22 = vector.broadcast %cst_7 : f32 to vector<128x128xf32>
    %23 = arith.mulf %21, %22 : vector<128x128xf32>
    %24 = arith.addf %20, %23 : vector<128x128xf32>
    %cst_8 = arith.constant dense<0.000000e+00> : vector<128x128xf32>
    %25 = tpu.matmul %23, %0, %cst_8 {dimension_numbers = #tpu.dot_dimension_numbers<[1], [0], [0], [1], [0, 0, 1, 1], [], []>} : vector<128x128xf32>, vector<128x128xf32>, vector<128x128xf32> -> vector<128x128xf32>
    %cst_9 = arith.constant 0.166666672 : f32
    %26 = vector.broadcast %cst_9 : f32 to vector<128x128xf32>
    %27 = arith.mulf %25, %26 : vector<128x128xf32>
    %28 = arith.addf %24, %27 : vector<128x128xf32>
    %cst_10 = arith.constant dense<0.000000e+00> : vector<128x128xf32>
    %29 = tpu.matmul %27, %0, %cst_10 {dimension_numbers = #tpu.dot_dimension_numbers<[1], [0], [0], [1], [0, 0, 1, 1], [], []>} : vector<128x128xf32>, vector<128x128xf32>, vector<128x128xf32> -> vector<128x128xf32>
    %cst_11 = arith.constant 0.142857149 : f32
    %30 = vector.broadcast %cst_11 : f32 to vector<128x128xf32>
    %31 = arith.mulf %29, %30 : vector<128x128xf32>
    %32 = arith.addf %28, %31 : vector<128x128xf32>
    %cst_12 = arith.constant dense<0.000000e+00> : vector<128x128xf32>
    %33 = tpu.matmul %31, %0, %cst_12 {dimension_numbers = #tpu.dot_dimension_numbers<[1], [0], [0], [1], [0, 0, 1, 1], [], []>} : vector<128x128xf32>, vector<128x128xf32>, vector<128x128xf32> -> vector<128x128xf32>
    %cst_13 = arith.constant 1.250000e-01 : f32
    %34 = vector.broadcast %cst_13 : f32 to vector<128x128xf32>
    %35 = arith.mulf %33, %34 : vector<128x128xf32>
    %36 = arith.addf %32, %35 : vector<128x128xf32>
    %cst_14 = arith.constant dense<0.000000e+00> : vector<128x128xf32>
    %37 = tpu.matmul %35, %0, %cst_14 {dimension_numbers = #tpu.dot_dimension_numbers<[1], [0], [0], [1], [0, 0, 1, 1], [], []>} : vector<128x128xf32>, vector<128x128xf32>, vector<128x128xf32> -> vector<128x128xf32>
    %cst_15 = arith.constant 0.111111112 : f32
    %38 = vector.broadcast %cst_15 : f32 to vector<128x128xf32>
    %39 = arith.mulf %37, %38 : vector<128x128xf32>
    %40 = arith.addf %36, %39 : vector<128x128xf32>
    %41 = arith.truncf %40 : vector<128x128xf32> to vector<128x128xbf16>
    %c0_16 = arith.constant 0 : index
    %c0_17 = arith.constant 0 : index
    %42 = vector.load %arg1[%c0_16, %c0_17] : memref<128x128xbf16, #tpu.memory_space<vmem>>, vector<128x128xbf16>
    tpu.vector_store %arg1[%c0_16, %c0_17], %41 {strides = array<i32>} : memref<128x128xbf16, #tpu.memory_space<vmem>>, vector<128x128xbf16>,
    return
  }
}

</mosaic_0001>

<bundles_post_ra>
// kernel: matrix_exp_forward.3
= control target key start
LH: loop header
LB: loop body
LE: loop exit
PB: predicated region body
PF: predicated region fallthrough
CT: control target
= control target key end

     0   :  { %v170_v0 = vmov 0.0   ;;  %vm171_vm0 = vmmov 0   ;;  %s217_s1 = inlined_call_operand.vmem [shape: bf16[128,128], index: 1, kind: input, shape index: {}]   ;;  %s218_s0 = inlined_call_operand.vmem [shape: bf16[2,128], index: 0, kind: input, shape index: {}]   ;;  %s219_s2 = inlined_call_operand.vmem [shape: bf16[2,128], index: 2, kind: output, shape index: {}]  }
   0x1   :  { %140 = vmatprep.subr.bf16.mxu0 %v170_v0  ;;  %v162_v1 = vld [vmem:[%s217_s1] sm:$0xff]   ;;  %156 = vmatprep.mubr.msk.bf16.mxu0 %vm171_vm0, %v170_v0  ;;  %v163_v2 = vld [vmem:[%s217_s1 + $0x8] sm:$0xff]   ;;  %v164_v3 = vld [vmem:[%s217_s1 + $0x10] sm:$0xff]  }
   0x2   :  { %141 = vmatpush3.bf16.msra.mxu0 %v162_v1  ;;  %v165_v4 = vld [vmem:[%s217_s1 + $0x18] sm:$0xff]   ;;  %v166_v5 = vld [vmem:[%s217_s1 + $0x20] sm:$0xff]   ;;  %v167_v6 = vld [vmem:[%s217_s1 + $0x28] sm:$0xff]  }
   0x3   :  { %142 = vmatprep.subr.bf16.mxu0 %v170_v0  ;;  %v168_v7 = vld [vmem:[%s217_s1 + $0x30] sm:$0xff]   ;;  %v169_v8 = vld [vmem:[%s217_s1 + $0x38] sm:$0xff]   ;;  %v12_v9 = vld [vmem:[%s218_s0] sm:$0x1] }
   0x6   :  { %143 = vmatpush3.bf16.msra.mxu0 %v163_v2 }
   0x7   :  { %144 = vmatprep.subr.bf16.mxu0 %v170_v0 }
   0xa   :  { %145 = vmatpush3.bf16.msra.mxu0 %v164_v3 }
   0xb   :  { %146 = vmatprep.subr.bf16.mxu0 %v170_v0 }
   0xe   :  { %147 = vmatpush3.bf16.msra.mxu0 %v165_v4 }
   0xf   :  { %148 = vmatprep.subr.bf16.mxu0 %v170_v0 }
  0x12   :  { %149 = vmatpush3.bf16.msra.mxu0 %v166_v5 }
  0x13   :  { %150 = vmatprep.subr.bf16.mxu0 %v170_v0 }
  0x16   :  { %151 = vmatpush3.bf16.msra.mxu0 %v167_v6 }
  0x17   :  { %152 = vmatprep.subr.bf16.mxu0 %v170_v0 }
  0x1a   :  { %153 = vmatpush3.bf16.msra.mxu0 %v168_v7 }
  0x1b   :  { %154 = vmatprep.subr.bf16.mxu0 %v170_v0 }
  0x1e   :  { %155 = vmatpush3.bf16.msra.mxu0 %v169_v8 }
  0x21   :  { %157 = vmatmul.mubr.bf16.vlgmr.msra.gmra.mrb[0].mxu0 %v12_v9 }
  0xf4   :  { %v111_v10 = vpop.f32.mrb[0].mxu0 }
  0xf5   :  { %v117_v11 = vpack.c.bf16 %v111_v10, %v111_v10  ;;  %v158_v12 = vpop.f32.mrb[1].mxu0 }
  0xf6   :  { %v114_v13 = vpop.f32.mrb[2].mxu0 }
  0xf7   :  { %118 = vst [vmem:[%s219_s2] sm:$0x1] %v117_v11  ;;  %v159_v14 = vpop.f32.mrb[3].mxu0 }

// kernel: matrix_exp_forward.2
= control target key start
LH: loop header
LB: loop body
LE: loop exit
PB: predicated region body
PF: predicated region fallthrough
CT: control target
= control target key end

     0   :  { %v24_v24 = vlaneseq  ;;  %v2663_v28 = vmov 0.0   ;;  %s3379_s0 = inlined_call_operand.vmem [shape: f32[128,128], index: 0, kind: input, shape index: {}]   ;;  %s3380_s1 = inlined_call_operand.vmem [shape: bf16[128,128], index: 1, kind: output, shape index: {}]  }
   0x1   :  { %v2677_v0 = vld [vmem:[%s3379_s0] sm:$0xff]  ;;  %v2682_v1 = vld [vmem:[%s3379_s0 + $0x8] sm:$0xff]  ;;  %v2687_v2 = vld [vmem:[%s3379_s0 + $0x10] sm:$0xff] }
   0x2   :  { %v2691_v3 = vpack.c.bf16 %v2682_v1, %v2677_v0  ;;  %v2696_v4 = vld [vmem:[%s3379_s0 + $0x18] sm:$0xff]  ;;  %1990 = vmatprep.mubr.f32.mxu0 %v2677_v0  ;;  %v2706_v6 = vld [vmem:[%s3379_s0 + $0x20] sm:$0xff]  ;;  %v2711_v7 = vld [vmem:[%s3379_s0 + $0x28] sm:$0xff]  ;;  %v2852_v25 = vshrl.u32 %v24_v24, 7  ;;  %v2855_v27 = vand.u32 127, %v24_v24 }
   0x3   :  { %v2701_v5 = vpack.c.bf16 %v2696_v4, %v2687_v2  ;;  %v2720_v8 = vpack.c.bf16 %v2711_v7, %v2706_v6  ;;  %v2726_v9 = vld [vmem:[%s3379_s0 + $0x30] sm:$0xff]  ;;  %v2731_v10 = vld [vmem:[%s3379_s0 + $0x38] sm:$0xff]  ;;  %v2744_v12 = vld [vmem:[%s3379_s0 + $0x40] sm:$0xff] }
   0x4   :  { %2407 = vmatprep.subr.bf16.mxu0 %v2691_v3  ;;  %2439 = vmatprep.subr.bf16.mxu1 %v2691_v3  ;;  %v2738_v11 = vpack.c.bf16 %v2731_v10, %v2726_v9  ;;  %v2749_v13 = vld [vmem:[%s3379_s0 + $0x48] sm:$0xff]  ;;  %v2762_v15 = vld [vmem:[%s3379_s0 + $0x50] sm:$0xff]  ;;  %v2767_v16 = vld [vmem:[%s3379_s0 + $0x58] sm:$0xff]  ;;  %v26_v26 = vadd.s32 8, %v2852_v25  ;;  %vm43_vm1 = vcmp.eq.s32.totalorder %v2852_v25, %v2855_v27  ;;  %v27_v24 = vadd.s32 16, %v2852_v25 }
   0x5   :  { %2409 = vmatpush3.bf16.msra.mxu0 %v2691_v3  ;;  %2441 = vmatpush3.bf16.msra.mxu1 %v2691_v3  ;;  %v2756_v14 = vpack.c.bf16 %v2749_v13, %v2744_v12  ;;  %v2774_v17 = vpack.c.bf16 %v2767_v16, %v2762_v15  ;;  %v2780_v18 = vld [vmem:[%s3379_s0 + $0x60] sm:$0xff]  ;;  %v2785_v19 = vld [vmem:[%s3379_s0 + $0x68] sm:$0xff]  ;;  %v2798_v21 = vld [vmem:[%s3379_s0 + $0x70] sm:$0xff] }
   0x6   :  { %2411 = vmatprep.subr.bf16.mxu0 %v2701_v5  ;;  %2443 = vmatprep.subr.bf16.mxu1 %v2701_v5  ;;  %v2792_v20 = vpack.c.bf16 %v2785_v19, %v2780_v18  ;;  %v2803_v22 = vld [vmem:[%s3379_s0 + $0x78] sm:$0xff]  ;;  %vm44_vm0 = vcmp.eq.s32.totalorder %v26_v26, %v2855_v27  ;;  %v1607_v26 = vsel %vm43_vm1, 1.0, %v2663_v28  ;;  %vm45_vm3 = vcmp.eq.s32.totalorder %v27_v24, %v2855_v27 }
   0x7   :  { %v2810_v23 = vpack.c.bf16 %v2803_v22, %v2798_v21  ;;  %v1608_v29 = vsel %vm44_vm0, 1.0, %v2663_v28 }
   0x8   :  { %v92_v30 = vadd.f32 %v1608_v29, %v2682_v1  ;;  %v30_v29 = vadd.s32 40, %v2852_v25 }
   0x9   :  { %2413 = vmatpush3.bf16.msra.mxu0 %v2701_v5  ;;  %2445 = vmatpush3.bf16.msra.mxu1 %v2701_v5 }
   0xa   :  { %2415 = vmatprep.subr.bf16.mxu0 %v2720_v8  ;;  %2447 = vmatprep.subr.bf16.mxu1 %v2720_v8  ;;  %vm48_vm4 = vcmp.eq.s32.totalorder %v30_v29, %v2855_v27 }
   0xd   :  { %2417 = vmatpush3.bf16.msra.mxu0 %v2720_v8  ;;  %2449 = vmatpush3.bf16.msra.mxu1 %v2720_v8 }
   0xe   :  { %2419 = vmatprep.subr.bf16.mxu0 %v2738_v11  ;;  %2451 = vmatprep.subr.bf16.mxu1 %v2738_v11 }
  0x11   :  { %2421 = vmatpush3.bf16.msra.mxu0 %v2738_v11  ;;  %2453 = vmatpush3.bf16.msra.mxu1 %v2738_v11 }
  0x12   :  { %2423 = vmatprep.subr.bf16.mxu0 %v2756_v14  ;;  %2455 = vmatprep.subr.bf16.mxu1 %v2756_v14 }
  0x15   :  { %2425 = vmatpush3.bf16.msra.mxu0 %v2756_v14  ;;  %2457 = vmatpush3.bf16.msra.mxu1 %v2756_v14 }
  0x16   :  { %2427 = vmatprep.subr.bf16.mxu0 %v2774_v17  ;;  %2459 = vmatprep.subr.bf16.mxu1 %v2774_v17 }
  0x19   :  { %2429 = vmatpush3.bf16.msra.mxu0 %v2774_v17  ;;  %2461 = vmatpush3.bf16.msra.mxu1 %v2774_v17 }
  0x1a   :  { %2431 = vmatprep.subr.bf16.mxu0 %v2792_v20  ;;  %2463 = vmatprep.subr.bf16.mxu1 %v2792_v20 }
  0x1d   :  { %2433 = vmatpush3.bf16.msra.mxu0 %v2792_v20  ;;  %2465 = vmatpush3.bf16.msra.mxu1 %v2792_v20 }
  0x1e   :  { %2435 = vmatprep.subr.bf16.mxu0 %v2810_v23  ;;  %2467 = vmatprep.subr.bf16.mxu1 %v2810_v23 }
  0x21   :  { %2437 = vmatpush3.bf16.msra.mxu0 %v2810_v23  ;;  %2469 = vmatpush3.bf16.msra.mxu1 %v2810_v23 }
  0x22   :  { %2471 = vmatprep.subr.bf16.mxu0 %v2691_v3  ;;  %2503 = vmatprep.subr.bf16.mxu1 %v2691_v3 }
  0x24   :  { %1991 = vmatmul.mubr.f32.vlgmr.msra.gmra.mrb[0].mxu0 %v2682_v1  ;;  %v28_v1 = vadd.s32 24, %v2852_v25 }
  0x25   :  { %1993 = vmatprep.mubr.f32.mxu0 %v2687_v2  ;;  %2473 = vmatpush3.bf16.msra.mxu0 %v2691_v3 }
  0x26   :  { %2475 = vmatprep.subr.bf16.mxu0 %v2701_v5  ;;  %vm46_vm2 = vcmp.eq.s32.totalorder %v28_v1, %v2855_v27 }
  0x28   :  { %1994 = vmatmul.mubr.f32.gmra.mrb[2].mxu0 %v2696_v4 }
  0x29   :  { %1996 = vmatprep.mubr.f32.mxu0 %v2706_v6  ;;  %2477 = vmatpush3.bf16.msra.mxu0 %v2701_v5 }
  0x2a   :  { %2479 = vmatprep.subr.bf16.mxu0 %v2720_v8 }
  0x2c   :  { %1997 = vmatmul.mubr.f32.gmra.mrb[4].mxu0 %v2711_v7 }
  0x2d   :  { %1999 = vmatprep.mubr.f32.mxu0 %v2726_v9  ;;  %2481 = vmatpush3.bf16.msra.mxu0 %v2720_v8 }
  0x2e   :  { %2483 = vmatprep.subr.bf16.mxu0 %v2738_v11 }
  0x30   :  { %2000 = vmatmul.mubr.f32.gmra.mrb[6].mxu0 %v2731_v10 }
  0x31   :  { %2002 = vmatprep.mubr.f32.mxu0 %v2744_v12  ;;  %2485 = vmatpush3.bf16.msra.mxu0 %v2738_v11 }
  0x32   :  { %2487 = vmatprep.subr.bf16.mxu0 %v2756_v14 }
  0x34   :  { %2003 = vmatmul.mubr.f32.gmra.mrb[8].mxu0 %v2749_v13 }
  0x35   :  { %2005 = vmatprep.mubr.f32.mxu0 %v2762_v15  ;;  %2489 = vmatpush3.bf16.msra.mxu0 %v2756_v14 }
  0x36   :  { %2491 = vmatprep.subr.bf16.mxu0 %v2774_v17 }
  0x38   :  { %2006 = vmatmul.mubr.f32.gmra.mrb[10].mxu0 %v2767_v16 }
  0x39   :  { %2008 = vmatprep.mubr.f32.mxu0 %v2780_v18  ;;  %2493 = vmatpush3.bf16.msra.mxu0 %v2774_v17 }
  0x3a   :  { %2495 = vmatprep.subr.bf16.mxu0 %v2792_v20 }
  0x3c   :  { %2009 = vmatmul.mubr.f32.gmra.mrb[12].mxu0 %v2785_v19 }
  0x3d   :  { %2011 = vmatprep.mubr.f32.mxu0 %v2798_v21  ;;  %2497 = vmatpush3.bf16.msra.mxu0 %v2792_v20 }
  0x3e   :  { %2499 = vmatprep.subr.bf16.mxu0 %v2810_v23 }
  0x40   :  { %2012 = vmatmul.mubr.f32.gmra.mrb[14].mxu0 %v2803_v22 }
  0x41   :  { %2501 = vmatpush3.bf16.msra.mxu0 %v2810_v23 }
  0x42   :  { %2535 = vmatprep.subr.bf16.mxu0 %v2691_v3 }
  0xf7   :  { %v1992_v31 = vpop.f32.mrb[0].mxu0 }
  0xf8   :  { %v253_v32 = vmul.f32 0.5, %v1992_v31  ;;  %v173_v33 = vpop.f32.mrb[1].mxu0  ;;  %v91_v31 = vadd.f32 %v1607_v26, %v2677_v0 }
  0xf9   :  { %v2860_v34 = vmul.f32 0.5, %v173_v33  ;;  %v1609_v33 = vsel %vm45_vm3, 1.0, %v2663_v28 }
  0xfa   :  { %v2862_v35 = vadd.f32 %v253_v32, %v92_v30  ;;  %v29_v30 = vadd.s32 32, %v2852_v25  ;;  %v93_v0 = vadd.f32 %v1609_v33, %v2687_v2 }
  0xfb   :  { %v1995_v36 = vpop.f32.mrb[2].mxu0  ;;  %2046 = vmatprep.mubr.f32.mxu1 %v2860_v34 }
  0xfc   :  { %v183_v37 = vpop.f32.mrb[3].mxu0  ;;  %2047 = vmatmul.mubr.f32.vlgmr.msra.gmra.mrb[0].mxu1 %v253_v32  ;;  %v2868_v39 = vmul.f32 0.5, %v1995_v36  ;;  %v1610_v32 = vsel %vm46_vm2, 1.0, %v2663_v28  ;;  %v32_v36 = vadd.s32 56, %v2852_v25  ;;  %vm47_vm5 = vcmp.eq.s32.totalorder %v29_v30, %v2855_v27 }
  0xfd   :  { %v2865_v38 = vmul.f32 0.5, %v183_v37  ;;  %2505 = vmatpush3.bf16.msra.mxu1 %v2691_v3  ;;  %v31_v37 = vadd.s32 48, %v2852_v25 }
  0xfe   :  { %2507 = vmatprep.subr.bf16.mxu1 %v2701_v5  ;;  %vm50_vm6 = vcmp.eq.s32.totalorder %v32_v36, %v2855_v27 }
  0xff   :  { %v1998_v40 = vpop.f32.mrb[4].mxu0  ;;  %2049 = vmatprep.mubr.f32.mxu1 %v2865_v38  ;;  %vm49_vm7 = vcmp.eq.s32.totalorder %v31_v37, %v2855_v27  ;;  %v270_v26 = vadd.f32 %v2865_v38, %v93_v0  ;;  %v1614_v29 = vsel %vm50_vm6, 1.0, %v2663_v28 }
 0x100   :  { %v193_v41 = vpop.f32.mrb[5].mxu0  ;;  %2050 = vmatmul.mubr.f32.gmra.mrb[2].mxu1 %v2868_v39  ;;  %v2876_v43 = vmul.f32 0.5, %v1998_v40  ;;  %v98_v36 = vadd.f32 %v1614_v29, %v2731_v10  ;;  %v38_v10 = vadd.s32 104, %v2852_v25 }
 0x101   :  { %v2873_v42 = vmul.f32 0.5, %v193_v41  ;;  %2509 = vmatpush3.bf16.msra.mxu1 %v2701_v5  ;;  %v94_v41 = vadd.f32 %v1610_v32, %v2696_v4  ;;  %v33_v4 = vadd.s32 64, %v2852_v25 }
 0x102   :  { %2511 = vmatprep.subr.bf16.mxu1 %v2720_v8  ;;  %vm56_vm12 = vcmp.eq.s32.totalorder %v38_v10, %v2855_v27 }
 0x103   :  { %v2001_v44 = vpop.f32.mrb[6].mxu0  ;;  %2052 = vmatprep.mubr.f32.mxu1 %v2873_v42  ;;  %v271_v2 = vadd.f32 %v2868_v39, %v94_v41  ;;  %v36_v39 = vadd.s32 88, %v2852_v25  ;;  %vm51_vm9 = vcmp.eq.s32.totalorder %v33_v4, %v2855_v27 }
 0x104   :  { %v203_v45 = vpop.f32.mrb[7].mxu0  ;;  %2053 = vmatmul.mubr.f32.gmra.mrb[4].mxu1 %v2876_v43  ;;  %v2884_v47 = vmul.f32 0.5, %v2001_v44  ;;  %v1615_v0 = vsel %vm51_vm9, 1.0, %v2663_v28 }
 0x105   :  { %v2881_v46 = vmul.f32 0.5, %v203_v45  ;;  %2513 = vmatpush3.bf16.msra.mxu1 %v2720_v8  ;;  %vm54_vm10 = vcmp.eq.s32.totalorder %v36_v39, %v2855_v27 }
 0x106   :  { %2515 = vmatprep.subr.bf16.mxu1 %v2738_v11 }
 0x107   :  { %v2004_v48 = vpop.f32.mrb[8].mxu0  ;;  %2055 = vmatprep.mubr.f32.mxu1 %v2881_v46 }
 0x108   :  { %v213_v49 = vpop.f32.mrb[9].mxu0  ;;  %2056 = vmatmul.mubr.f32.gmra.mrb[6].mxu1 %v2884_v47  ;;  %v2892_v51 = vmul.f32 0.5, %v2004_v48  ;;  %v268_v48 = vadd.f32 %v2860_v34, %v91_v31  ;;  %v1613_v31 = vsel %vm49_vm7, 1.0, %v2663_v28 }
 0x109   :  { %v2889_v50 = vmul.f32 0.5, %v213_v49  ;;  %2517 = vmatpush3.bf16.msra.mxu1 %v2738_v11  ;;  %v1612_v49 = vsel %vm48_vm4, 1.0, %v2663_v28 }
 0x10a   :  { %2519 = vmatprep.subr.bf16.mxu1 %v2756_v14 }
 0x10b   :  { %v2007_v52 = vpop.f32.mrb[10].mxu0  ;;  %2058 = vmatprep.mubr.f32.mxu1 %v2889_v50 }
 0x10c   :  { %v223_v53 = vpop.f32.mrb[11].mxu0  ;;  %2059 = vmatmul.mubr.f32.gmra.mrb[8].mxu1 %v2892_v51  ;;  %v2900_v55 = vmul.f32 0.5, %v2007_v52 }
 0x10d   :  { %v2897_v54 = vmul.f32 0.5, %v223_v53  ;;  %2521 = vmatpush3.bf16.msra.mxu1 %v2756_v14  ;;  %v1611_v53 = vsel %vm47_vm5, 1.0, %v2663_v28 }
 0x10e   :  { %2523 = vmatprep.subr.bf16.mxu1 %v2774_v17 }
 0x10f   :  { %v2010_v56 = vpop.f32.mrb[12].mxu0  ;;  %2061 = vmatprep.mubr.f32.mxu1 %v2897_v54 }
 0x110   :  { %v233_v57 = vpop.f32.mrb[13].mxu0  ;;  %2062 = vmatmul.mubr.f32.gmra.mrb[10].mxu1 %v2900_v55  ;;  %v2908_v59 = vmul.f32 0.5, %v2010_v56  ;;  %v34_v56 = vadd.s32 72, %v2852_v25 }
 0x111   :  { %v2905_v58 = vmul.f32 0.5, %v233_v57  ;;  %2525 = vmatpush3.bf16.msra.mxu1 %v2774_v17 }
 0x112   :  { %2527 = vmatprep.subr.bf16.mxu1 %v2792_v20  ;;  %vm52_vm8 = vcmp.eq.s32.totalorder %v34_v56, %v2855_v27 }
 0x113   :  { %v2013_v60 = vpop.f32.mrb[14].mxu0  ;;  %2064 = vmatprep.mubr.f32.mxu1 %v2905_v58 }
 0x114   :  { %v243_v61 = vpop.f32.mrb[15].mxu0  ;;  %2065 = vmatmul.mubr.f32.gmra.mrb[12].mxu1 %v2908_v59  ;;  %v2916_v63 = vmul.f32 0.5, %v2013_v60 }
 0x115   :  { %v2913_v62 = vmul.f32 0.5, %v243_v61  ;;  %2529 = vmatpush3.bf16.msra.mxu1 %v2792_v20  ;;  %v96_v61 = vadd.f32 %v1612_v49, %v2711_v7  ;;  %v35_v7 = vadd.s32 80, %v2852_v25 }
 0x116   :  { %2531 = vmatprep.subr.bf16.mxu1 %v2810_v23 }
 0x117   :  { %2067 = vmatprep.mubr.f32.mxu1 %v2913_v62  ;;  %v273_v33 = vadd.f32 %v2876_v43, %v96_v61  ;;  %vm53_vm11 = vcmp.eq.s32.totalorder %v35_v7, %v2855_v27  ;;  %v1618_v61 = vsel %vm54_vm10, 1.0, %v2663_v28 }
 0x118   :  { %2068 = vmatmul.mubr.f32.gmra.mrb[14].mxu1 %v2916_v63  ;;  %v102_v29 = vadd.f32 %v1618_v61, %v2767_v16 }
 0x119   :  { %2533 = vmatpush3.bf16.msra.mxu1 %v2810_v23 }
 0x11a   :  { %2567 = vmatprep.subr.bf16.mxu1 %v2691_v3 }
 0x1cf   :  { %v2048_v40 = vpop.f32.mrb[0].mxu1 }
 0x1d0   :  { %v430_v44 = vmul.f32 0.33333334, %v2048_v40  ;;  %v350_v45 = vpop.f32.mrb[1].mxu1 }
 0x1d1   :  { %v429_v52 = vmul.f32 0.33333334, %v350_v45  ;;  %v1616_v45 = vsel %vm52_vm8, 1.0, %v2663_v28 }
 0x1d2   :  { %v2947_v57 = vadd.f32 %v430_v44, %v2862_v35  ;;  %v95_v35 = vadd.f32 %v1611_v53, %v2706_v6  ;;  %v100_v53 = vadd.f32 %v1616_v45, %v2749_v13  ;;  %v40_v13 = vadd.s32 120, %v2852_v25 }
 0x1d3   :  { %v2951_v60 = vadd.f32 %v429_v52, %v268_v48  ;;  %v2051_v34 = vpop.f32.mrb[2].mxu1  ;;  %2102 = vmatprep.mubr.f32.mxu0 %v429_v52  ;;  %v275_v52 = vadd.f32 %v2884_v47, %v98_v36 }
 0x1d4   :  { %v432_v1 = vmul.f32 0.33333334, %v2051_v34  ;;  %v360_v24 = vpop.f32.mrb[3].mxu1  ;;  %2103 = vmatmul.mubr.f32.vlgmr.msra.gmra.mrb[16].mxu0 %v430_v44  ;;  %v272_v41 = vadd.f32 %v2873_v42, %v95_v35  ;;  %v97_v44 = vadd.f32 %v1613_v31, %v2726_v9  ;;  %v37_v9 = vadd.s32 96, %v2852_v25 }
 0x1d5   :  { %v431_v30 = vmul.f32 0.33333334, %v360_v24  ;;  %2537 = vmatpush3.bf16.msra.mxu0 %v2691_v3  ;;  %v1617_v24 = vsel %vm53_vm11, 1.0, %v2663_v28  ;;  %v277_v35 = vadd.f32 %v2892_v51, %v100_v53  ;;  %vm58_vm14 = vcmp.eq.s32.totalorder %v40_v13, %v2855_v27 }
 0x1d6   :  { %v2962_v32 = vadd.f32 %v432_v1, %v271_v2  ;;  %2539 = vmatprep.subr.bf16.mxu0 %v2701_v5  ;;  %v274_v34 = vadd.f32 %v2881_v46, %v97_v44  ;;  %v99_v2 = vadd.f32 %v1615_v0, %v2744_v12  ;;  %vm55_vm13 = vcmp.eq.s32.totalorder %v37_v9, %v2855_v27 }
 0x1d7   :  { %v2967_v6 = vadd.f32 %v431_v30, %v270_v26  ;;  %v2054_v38 = vpop.f32.mrb[4].mxu1  ;;  %2105 = vmatprep.mubr.f32.mxu0 %v431_v30  ;;  %v39_v12 = vadd.s32 112, %v2852_v25  ;;  %v101_v7 = vadd.f32 %v1617_v24, %v2762_v15  ;;  %v1622_v45 = vsel %vm58_vm14, 1.0, %v2663_v28 }
 0x1d8   :  { %v434_v37 = vmul.f32 0.33333334, %v2054_v38  ;;  %v370_v40 = vpop.f32.mrb[5].mxu1  ;;  %2106 = vmatmul.mubr.f32.gmra.mrb[18].mxu0 %v432_v1  ;;  %v276_v39 = vadd.f32 %v2889_v50, %v99_v2  ;;  %v1620_v38 = vsel %vm56_vm12, 1.0, %v2663_v28  ;;  %v279_v50 = vadd.f32 %v2900_v55, %v102_v29 }
 0x1d9   :  { %v433_v48 = vmul.f32 0.33333334, %v370_v40  ;;  %2541 = vmatpush3.bf16.msra.mxu0 %v2701_v5  ;;  %vm57_vm15 = vcmp.eq.s32.totalorder %v39_v12, %v2855_v27  ;;  %v104_v36 = vadd.f32 %v1620_v38, %v2785_v19 }
 0x1da   :  { %v2980_v43 = vadd.f32 %v434_v37, %v273_v33  ;;  %2543 = vmatprep.subr.bf16.mxu0 %v2720_v8  ;;  %v1619_v33 = vsel %vm55_vm13, 1.0, %v2663_v28  ;;  %v1621_v27 = vsel %vm57_vm15, 1.0, %v2663_v28 }
 0x1db   :  { %v2985_v42 = vadd.f32 %v433_v48, %v272_v41  ;;  %v2057_v49 = vpop.f32.mrb[6].mxu1  ;;  %2108 = vmatprep.mubr.f32.mxu0 %v433_v48  ;;  %v278_v41 = vadd.f32 %v2897_v54, %v101_v7  ;;  %v103_v44 = vadd.f32 %v1619_v33, %v2780_v18  ;;  %v281_v10 = vadd.f32 %v2908_v59, %v104_v36 }
 0x1dc   :  { %v436_v56 = vmul.f32 0.33333334, %v2057_v49  ;;  %v380_v4 = vpop.f32.mrb[7].mxu1  ;;  %2109 = vmatmul.mubr.f32.gmra.mrb[20].mxu0 %v434_v37  ;;  %v106_v54 = vadd.f32 %v1622_v45, %v2803_v22 }
 0x1dd   :  { %v435_v1 = vmul.f32 0.33333334, %v380_v4  ;;  %2545 = vmatpush3.bf16.msra.mxu0 %v2720_v8  ;;  %v280_v49 = vadd.f32 %v2905_v58, %v103_v44 }
 0x1de   :  { %v2998_v47 = vadd.f32 %v436_v56, %v275_v52  ;;  %2547 = vmatprep.subr.bf16.mxu0 %v2738_v11  ;;  %v105_v52 = vadd.f32 %v1621_v27, %v2798_v21  ;;  %v283_v22 = vadd.f32 %v2916_v63, %v106_v54 }
 0x1df   :  { %v3003_v46 = vadd.f32 %v435_v1, %v274_v34  ;;  %v2060_v26 = vpop.f32.mrb[8].mxu1  ;;  %2111 = vmatprep.mubr.f32.mxu0 %v435_v1 }
 0x1e0   :  { %v438_v30 = vmul.f32 0.33333334, %v2060_v26  ;;  %v390_v31 = vpop.f32.mrb[9].mxu1  ;;  %2112 = vmatmul.mubr.f32.gmra.mrb[22].mxu0 %v436_v56  ;;  %v282_v58 = vadd.f32 %v2913_v62, %v105_v52 }
 0x1e1   :  { %v437_v25 = vmul.f32 0.33333334, %v390_v31  ;;  %2549 = vmatpush3.bf16.msra.mxu0 %v2738_v11 }
 0x1e2   :  { %v3015_v51 = vadd.f32 %v438_v30, %v277_v35  ;;  %2551 = vmatprep.subr.bf16.mxu0 %v2756_v14 }
 0x1e3   :  { %v3019_v16 = vadd.f32 %v437_v25, %v276_v39  ;;  %v2063_v15 = vpop.f32.mrb[10].mxu1  ;;  %2114 = vmatprep.mubr.f32.mxu0 %v437_v25 }
 0x1e4   :  { %v440_v37 = vmul.f32 0.33333334, %v2063_v15  ;;  %v400_v40 = vpop.f32.mrb[11].mxu1  ;;  %2115 = vmatmul.mubr.f32.gmra.mrb[24].mxu0 %v438_v30 }
 0x1e5   :  { %v439_v48 = vmul.f32 0.33333334, %v400_v40  ;;  %2553 = vmatpush3.bf16.msra.mxu0 %v2756_v14 }
 0x1e6   :  { %v3028_v0 = vadd.f32 %v440_v37, %v279_v50  ;;  %2555 = vmatprep.subr.bf16.mxu0 %v2774_v17 }
 0x1e7   :  { %v3031_v55 = vadd.f32 %v439_v48, %v278_v41  ;;  %v2066_v19 = vpop.f32.mrb[12].mxu1  ;;  %2117 = vmatprep.mubr.f32.mxu0 %v439_v48 }
 0x1e8   :  { %v442_v18 = vmul.f32 0.33333334, %v2066_v19  ;;  %v410_v9 = vpop.f32.mrb[13].mxu1  ;;  %2118 = vmatmul.mubr.f32.gmra.mrb[26].mxu0 %v440_v37 }
 0x1e9   :  { %v441_v28 = vmul.f32 0.33333334, %v410_v9  ;;  %2557 = vmatpush3.bf16.msra.mxu0 %v2774_v17 }
 0x1ea   :  { %v3038_v53 = vadd.f32 %v442_v18, %v281_v10  ;;  %2559 = vmatprep.subr.bf16.mxu0 %v2792_v20 }
 0x1eb   :  { %v3041_v56 = vadd.f32 %v441_v28, %v280_v49  ;;  %v2069_v4 = vpop.f32.mrb[14].mxu1  ;;  %2120 = vmatprep.mubr.f32.mxu0 %v441_v28 }
 0x1ec   :  { %v444_v59 = vmul.f32 0.33333334, %v2069_v4  ;;  %v420_v34 = vpop.f32.mrb[15].mxu1  ;;  %2121 = vmatmul.mubr.f32.gmra.mrb[28].mxu0 %v442_v18 }
 0x1ed   :  { %v443_v2 = vmul.f32 0.33333334, %v420_v34  ;;  %2561 = vmatpush3.bf16.msra.mxu0 %v2792_v20 }
 0x1ee   :  { %v3046_v21 = vadd.f32 %v444_v59, %v283_v22  ;;  %2563 = vmatprep.subr.bf16.mxu0 %v2810_v23 }
 0x1ef   :  { %v3049_v61 = vadd.f32 %v443_v2, %v282_v58  ;;  %2123 = vmatprep.mubr.f32.mxu0 %v443_v2 }
 0x1f0   :  { %2124 = vmatmul.mubr.f32.gmra.mrb[30].mxu0 %v444_v59 }
 0x1f1   :  { %2565 = vmatpush3.bf16.msra.mxu0 %v2810_v23 }
 0x1f2   :  { %2599 = vmatprep.subr.bf16.mxu0 %v2691_v3 }
 0x2a7   :  { %v2104_v63 = vpop.f32.mrb[16].mxu0 }
 0x2a8   :  { %v607_v1 = vmul.f32 0.25, %v2104_v63  ;;  %v527_v24 = vpop.f32.mrb[17].mxu0 }
 0x2a9   :  { %v606_v13 = vmul.f32 0.25, %v527_v24 }
 0x2aa   :  { %v3054_v62 = vadd.f32 %v607_v1, %v2947_v57 }
 0x2ab   :  { %v3057_v12 = vadd.f32 %v606_v13, %v2951_v60  ;;  %v2107_v26 = vpop.f32.mrb[18].mxu0  ;;  %2158 = vmatprep.mubr.f32.mxu1 %v606_v13 }
 0x2ac   :  { %v609_v35 = vmul.f32 0.25, %v2107_v26  ;;  %v537_v29 = vpop.f32.mrb[19].mxu0  ;;  %2159 = vmatmul.mubr.f32.vlgmr.msra.gmra.mrb[16].mxu1 %v607_v1 }
 0x2ad   :  { %v608_v30 = vmul.f32 0.25, %v537_v29  ;;  %2569 = vmatpush3.bf16.msra.mxu1 %v2691_v3 }
 0x2ae   :  { %v3061_v31 = vadd.f32 %v609_v35, %v2962_v32  ;;  %2571 = vmatprep.subr.bf16.mxu1 %v2701_v5 }
 0x2af   :  { %v3065_v39 = vadd.f32 %v608_v30, %v2967_v6  ;;  %v2110_v57 = vpop.f32.mrb[20].mxu0  ;;  %2161 = vmatprep.mubr.f32.mxu1 %v608_v30 }
 0x2b0   :  { %v611_v60 = vmul.f32 0.25, %v2110_v57  ;;  %v547_v7 = vpop.f32.mrb[21].mxu0  ;;  %2162 = vmatmul.mubr.f32.gmra.mrb[18].mxu1 %v609_v35 }
 0x2b1   :  { %v610_v38 = vmul.f32 0.25, %v547_v7  ;;  %2573 = vmatpush3.bf16.msra.mxu1 %v2701_v5 }
 0x2b2   :  { %v3069_v25 = vadd.f32 %v611_v60, %v2980_v43  ;;  %2575 = vmatprep.subr.bf16.mxu1 %v2720_v8 }
 0x2b3   :  { %v3073_v32 = vadd.f32 %v610_v38, %v2985_v42  ;;  %v2113_v33 = vpop.f32.mrb[22].mxu0  ;;  %2164 = vmatprep.mubr.f32.mxu1 %v610_v38 }
 0x2b4   :  { %v613_v6 = vmul.f32 0.25, %v2113_v33  ;;  %v557_v15 = vpop.f32.mrb[23].mxu0  ;;  %2165 = vmatmul.mubr.f32.gmra.mrb[20].mxu1 %v611_v60 }
 0x2b5   :  { %v612_v50 = vmul.f32 0.25, %v557_v15  ;;  %2577 = vmatpush3.bf16.msra.mxu1 %v2720_v8 }
 0x2b6   :  { %v3077_v36 = vadd.f32 %v613_v6, %v2998_v47  ;;  %2579 = vmatprep.subr.bf16.mxu1 %v2738_v11 }
 0x2b7   :  { %v3081_v43 = vadd.f32 %v612_v50, %v3003_v46  ;;  %v2116_v37 = vpop.f32.mrb[24].mxu0  ;;  %2167 = vmatprep.mubr.f32.mxu1 %v612_v50 }
 0x2b8   :  { %v615_v42 = vmul.f32 0.25, %v2116_v37  ;;  %v567_v40 = vpop.f32.mrb[25].mxu0  ;;  %2168 = vmatmul.mubr.f32.gmra.mrb[22].mxu1 %v613_v6 }
 0x2b9   :  { %v614_v41 = vmul.f32 0.25, %v567_v40  ;;  %2581 = vmatpush3.bf16.msra.mxu1 %v2738_v11 }
 0x2ba   :  { %v3085_v44 = vadd.f32 %v615_v42, %v3015_v51  ;;  %2583 = vmatprep.subr.bf16.mxu1 %v2756_v14 }
 0x2bb   :  { %v3089_v47 = vadd.f32 %v614_v41, %v3019_v16  ;;  %v2119_v45 = vpop.f32.mrb[26].mxu0  ;;  %2170 = vmatprep.mubr.f32.mxu1 %v614_v41 }
 0x2bc   :  { %v617_v46 = vmul.f32 0.25, %v2119_v45  ;;  %v577_v48 = vpop.f32.mrb[27].mxu0  ;;  %2171 = vmatmul.mubr.f32.gmra.mrb[24].mxu1 %v615_v42 }
 0x2bd   :  { %v616_v27 = vmul.f32 0.25, %v577_v48  ;;  %2585 = vmatpush3.bf16.msra.mxu1 %v2756_v14 }
 0x2be   :  { %v3093_v19 = vadd.f32 %v617_v46, %v3028_v0  ;;  %2587 = vmatprep.subr.bf16.mxu1 %v2774_v17 }
 0x2bf   :  { %v3097_v51 = vadd.f32 %v616_v27, %v3031_v55  ;;  %v2122_v10 = vpop.f32.mrb[28].mxu0  ;;  %2173 = vmatprep.mubr.f32.mxu1 %v616_v27 }
 0x2c0   :  { %v619_v16 = vmul.f32 0.25, %v2122_v10  ;;  %v587_v54 = vpop.f32.mrb[29].mxu0  ;;  %2174 = vmatmul.mubr.f32.gmra.mrb[26].mxu1 %v617_v46 }
 0x2c1   :  { %v618_v18 = vmul.f32 0.25, %v587_v54  ;;  %2589 = vmatpush3.bf16.msra.mxu1 %v2774_v17 }
 0x2c2   :  { %v3101_v9 = vadd.f32 %v619_v16, %v3038_v53  ;;  %2591 = vmatprep.subr.bf16.mxu1 %v2792_v20 }
 0x2c3   :  { %v3105_v0 = vadd.f32 %v618_v18, %v3041_v56  ;;  %v2125_v49 = vpop.f32.mrb[30].mxu0  ;;  %2176 = vmatprep.mubr.f32.mxu1 %v618_v18 }
 0x2c4   :  { %v621_v55 = vmul.f32 0.25, %v2125_v49  ;;  %v597_v52 = vpop.f32.mrb[31].mxu0  ;;  %2177 = vmatmul.mubr.f32.gmra.mrb[28].mxu1 %v619_v16 }
 0x2c5   :  { %v620_v28 = vmul.f32 0.25, %v597_v52  ;;  %2593 = vmatpush3.bf16.msra.mxu1 %v2792_v20 }
 0x2c6   :  { %v3109_v4 = vadd.f32 %v621_v55, %v3046_v21  ;;  %2595 = vmatprep.subr.bf16.mxu1 %v2810_v23 }
 0x2c7   :  { %v3113_v53 = vadd.f32 %v620_v28, %v3049_v61  ;;  %2179 = vmatprep.mubr.f32.mxu1 %v620_v28 }
 0x2c8   :  { %2180 = vmatmul.mubr.f32.gmra.mrb[30].mxu1 %v621_v55 }
 0x2c9   :  { %2597 = vmatpush3.bf16.msra.mxu1 %v2810_v23 }
 0x2ca   :  { %2631 = vmatprep.subr.bf16.mxu1 %v2691_v3 }
 0x37f   :  { %v2160_v56 = vpop.f32.mrb[16].mxu1 }
 0x380   :  { %v784_v22 = vmul.f32 0.2, %v2160_v56  ;;  %v704_v59 = vpop.f32.mrb[17].mxu1 }
 0x381   :  { %v783_v34 = vmul.f32 0.2, %v704_v59 }
 0x382   :  { %v3118_v58 = vadd.f32 %v784_v22, %v3054_v62 }
 0x383   :  { %v3121_v2 = vadd.f32 %v783_v34, %v3057_v12  ;;  %v2163_v21 = vpop.f32.mrb[18].mxu1  ;;  %2214 = vmatprep.mubr.f32.mxu0 %v783_v34 }
 0x384   :  { %v786_v61 = vmul.f32 0.2, %v2163_v21  ;;  %v714_v63 = vpop.f32.mrb[19].mxu1  ;;  %2215 = vmatmul.mubr.f32.vlgmr.msra.gmra.mrb[32].mxu0 %v784_v22 }
 0x385   :  { %v785_v1 = vmul.f32 0.2, %v714_v63  ;;  %2601 = vmatpush3.bf16.msra.mxu0 %v2691_v3 }
 0x386   :  { %v3125_v24 = vadd.f32 %v786_v61, %v3061_v31  ;;  %2603 = vmatprep.subr.bf16.mxu0 %v2701_v5 }
 0x387   :  { %v3129_v13 = vadd.f32 %v785_v1, %v3065_v39  ;;  %v2166_v62 = vpop.f32.mrb[20].mxu1  ;;  %2217 = vmatprep.mubr.f32.mxu0 %v785_v1 }
 0x388   :  { %v788_v12 = vmul.f32 0.2, %v2166_v62  ;;  %v724_v26 = vpop.f32.mrb[21].mxu1  ;;  %2218 = vmatmul.mubr.f32.gmra.mrb[34].mxu0 %v786_v61 }
 0x389   :  { %v787_v35 = vmul.f32 0.2, %v724_v26  ;;  %2605 = vmatpush3.bf16.msra.mxu0 %v2701_v5 }
 0x38a   :  { %v3133_v29 = vadd.f32 %v788_v12, %v3069_v25  ;;  %2607 = vmatprep.subr.bf16.mxu0 %v2720_v8 }
 0x38b   :  { %v3137_v30 = vadd.f32 %v787_v35, %v3073_v32  ;;  %v2169_v31 = vpop.f32.mrb[22].mxu1  ;;  %2220 = vmatprep.mubr.f32.mxu0 %v787_v35 }
 0x38c   :  { %v790_v39 = vmul.f32 0.2, %v2169_v31  ;;  %v734_v57 = vpop.f32.mrb[23].mxu1  ;;  %2221 = vmatmul.mubr.f32.gmra.mrb[36].mxu0 %v788_v12 }
 0x38d   :  { %v789_v60 = vmul.f32 0.2, %v734_v57  ;;  %2609 = vmatpush3.bf16.msra.mxu0 %v2720_v8 }
 0x38e   :  { %v3141_v7 = vadd.f32 %v790_v39, %v3077_v36  ;;  %2611 = vmatprep.subr.bf16.mxu0 %v2738_v11 }
 0x38f   :  { %v3145_v38 = vadd.f32 %v789_v60, %v3081_v43  ;;  %v2172_v25 = vpop.f32.mrb[24].mxu1  ;;  %2223 = vmatprep.mubr.f32.mxu0 %v789_v60 }
 0x390   :  { %v792_v32 = vmul.f32 0.2, %v2172_v25  ;;  %v744_v33 = vpop.f32.mrb[25].mxu1  ;;  %2224 = vmatmul.mubr.f32.gmra.mrb[38].mxu0 %v790_v39 }
 0x391   :  { %v791_v6 = vmul.f32 0.2, %v744_v33  ;;  %2613 = vmatpush3.bf16.msra.mxu0 %v2738_v11 }
 0x392   :  { %v3149_v15 = vadd.f32 %v792_v32, %v3085_v44  ;;  %2615 = vmatprep.subr.bf16.mxu0 %v2756_v14 }
 0x393   :  { %v3153_v50 = vadd.f32 %v791_v6, %v3089_v47  ;;  %v2175_v36 = vpop.f32.mrb[26].mxu1  ;;  %2226 = vmatprep.mubr.f32.mxu0 %v791_v6 }
 0x394   :  { %v794_v43 = vmul.f32 0.2, %v2175_v36  ;;  %v754_v37 = vpop.f32.mrb[27].mxu1  ;;  %2227 = vmatmul.mubr.f32.gmra.mrb[40].mxu0 %v792_v32 }
 0x395   :  { %v793_v42 = vmul.f32 0.2, %v754_v37  ;;  %2617 = vmatpush3.bf16.msra.mxu0 %v2756_v14 }
 0x396   :  { %v3157_v40 = vadd.f32 %v794_v43, %v3093_v19  ;;  %2619 = vmatprep.subr.bf16.mxu0 %v2774_v17 }
 0x397   :  { %v3161_v41 = vadd.f32 %v793_v42, %v3097_v51  ;;  %v2178_v44 = vpop.f32.mrb[28].mxu1  ;;  %2229 = vmatprep.mubr.f32.mxu0 %v793_v42 }
 0x398   :  { %v796_v47 = vmul.f32 0.2, %v2178_v44  ;;  %v764_v45 = vpop.f32.mrb[29].mxu1  ;;  %2230 = vmatmul.mubr.f32.gmra.mrb[42].mxu0 %v794_v43 }
 0x399   :  { %v795_v46 = vmul.f32 0.2, %v764_v45  ;;  %2621 = vmatpush3.bf16.msra.mxu0 %v2774_v17 }
 0x39a   :  { %v3165_v48 = vadd.f32 %v796_v47, %v3101_v9  ;;  %2623 = vmatprep.subr.bf16.mxu0 %v2792_v20 }
 0x39b   :  { %v3169_v27 = vadd.f32 %v795_v46, %v3105_v0  ;;  %v2181_v19 = vpop.f32.mrb[30].mxu1  ;;  %2232 = vmatprep.mubr.f32.mxu0 %v795_v46 }
 0x39c   :  { %v798_v51 = vmul.f32 0.2, %v2181_v19  ;;  %v774_v10 = vpop.f32.mrb[31].mxu1  ;;  %2233 = vmatmul.mubr.f32.gmra.mrb[44].mxu0 %v796_v47 }
 0x39d   :  { %v797_v16 = vmul.f32 0.2, %v774_v10  ;;  %2625 = vmatpush3.bf16.msra.mxu0 %v2792_v20 }
 0x39e   :  { %v3173_v54 = vadd.f32 %v798_v51, %v3109_v4  ;;  %2627 = vmatprep.subr.bf16.mxu0 %v2810_v23 }
 0x39f   :  { %v3177_v18 = vadd.f32 %v797_v16, %v3113_v53  ;;  %2235 = vmatprep.mubr.f32.mxu0 %v797_v16 }
 0x3a0   :  { %2236 = vmatmul.mubr.f32.gmra.mrb[46].mxu0 %v798_v51 }
 0x3a1   :  { %2629 = vmatpush3.bf16.msra.mxu0 %v2810_v23 }
 0x457   :  { %v2216_v9 = vpop.f32.mrb[32].mxu0 }
 0x458   :  { %v961_v0 = vmul.f32 0.16666667, %v2216_v9  ;;  %v881_v49 = vpop.f32.mrb[33].mxu0 }
 0x459   :  { %v960_v55 = vmul.f32 0.16666667, %v881_v49 }
 0x45a   :  { %v3181_v52 = vadd.f32 %v961_v0, %v3118_v58 }
 0x45b   :  { %v3184_v28 = vadd.f32 %v960_v55, %v3121_v2  ;;  %v2219_v4 = vpop.f32.mrb[34].mxu0  ;;  %2270 = vmatprep.mubr.f32.mxu1 %v960_v55 }
 0x45c   :  { %v963_v56 = vmul.f32 0.16666667, %v2219_v4  ;;  %v891_v22 = vpop.f32.mrb[35].mxu0  ;;  %2271 = vmatmul.mubr.f32.vlgmr.msra.gmra.mrb[32].mxu1 %v961_v0 }
 0x45d   :  { %v962_v53 = vmul.f32 0.16666667, %v891_v22  ;;  %2633 = vmatpush3.bf16.msra.mxu1 %v2691_v3 }
 0x45e   :  { %v3188_v59 = vadd.f32 %v963_v56, %v3125_v24  ;;  %2635 = vmatprep.subr.bf16.mxu1 %v2701_v5 }
 0x45f   :  { %v3192_v34 = vadd.f32 %v962_v53, %v3129_v13  ;;  %v2222_v58 = vpop.f32.mrb[36].mxu0  ;;  %2273 = vmatprep.mubr.f32.mxu1 %v962_v53 }
 0x460   :  { %v965_v2 = vmul.f32 0.16666667, %v2222_v58  ;;  %v901_v21 = vpop.f32.mrb[37].mxu0  ;;  %2274 = vmatmul.mubr.f32.gmra.mrb[34].mxu1 %v963_v56 }
 0x461   :  { %v964_v61 = vmul.f32 0.16666667, %v901_v21  ;;  %2637 = vmatpush3.bf16.msra.mxu1 %v2701_v5 }
 0x462   :  { %v3196_v63 = vadd.f32 %v965_v2, %v3133_v29  ;;  %2639 = vmatprep.subr.bf16.mxu1 %v2720_v8 }
 0x463   :  { %v3200_v3 = vadd.f32 %v964_v61, %v3137_v30  ;;  %v2225_v1 = vpop.f32.mrb[38].mxu0  ;;  %2276 = vmatprep.mubr.f32.mxu1 %v964_v61 }
 0x464   :  { %v967_v24 = vmul.f32 0.16666667, %v2225_v1  ;;  %v911_v13 = vpop.f32.mrb[39].mxu0  ;;  %2277 = vmatmul.mubr.f32.gmra.mrb[36].mxu1 %v965_v2 }
 0x465   :  { %v966_v62 = vmul.f32 0.16666667, %v911_v13  ;;  %2641 = vmatpush3.bf16.msra.mxu1 %v2720_v8 }
 0x466   :  { %v3204_v12 = vadd.f32 %v967_v24, %v3141_v7  ;;  %2643 = vmatprep.subr.bf16.mxu1 %v2738_v11 }
 0x467   :  { %v3208_v5 = vadd.f32 %v966_v62, %v3145_v38  ;;  %v2228_v26 = vpop.f32.mrb[40].mxu0  ;;  %2279 = vmatprep.mubr.f32.mxu1 %v966_v62 }
 0x468   :  { %v969_v35 = vmul.f32 0.16666667, %v2228_v26  ;;  %v921_v29 = vpop.f32.mrb[41].mxu0  ;;  %2280 = vmatmul.mubr.f32.gmra.mrb[38].mxu1 %v967_v24 }
 0x469   :  { %v968_v30 = vmul.f32 0.16666667, %v921_v29  ;;  %2645 = vmatpush3.bf16.msra.mxu1 %v2738_v11 }
 0x46a   :  { %v3212_v31 = vadd.f32 %v969_v35, %v3149_v15  ;;  %2647 = vmatprep.subr.bf16.mxu1 %v2756_v14 }
 0x46b   :  { %v3216_v8 = vadd.f32 %v968_v30, %v3153_v50  ;;  %v2231_v39 = vpop.f32.mrb[42].mxu0  ;;  %2282 = vmatprep.mubr.f32.mxu1 %v968_v30 }
 0x46c   :  { %v971_v57 = vmul.f32 0.16666667, %v2231_v39  ;;  %v931_v60 = vpop.f32.mrb[43].mxu0  ;;  %2283 = vmatmul.mubr.f32.gmra.mrb[40].mxu1 %v969_v35 }
 0x46d   :  { %v970_v7 = vmul.f32 0.16666667, %v931_v60  ;;  %2649 = vmatpush3.bf16.msra.mxu1 %v2756_v14 }
 0x46e   :  { %v3220_v38 = vadd.f32 %v971_v57, %v3157_v40  ;;  %2651 = vmatprep.subr.bf16.mxu1 %v2774_v17 }
 0x46f   :  { %v3224_v11 = vadd.f32 %v970_v7, %v3161_v41  ;;  %v2234_v25 = vpop.f32.mrb[44].mxu0  ;;  %2285 = vmatprep.mubr.f32.mxu1 %v970_v7 }
 0x470   :  { %v973_v32 = vmul.f32 0.16666667, %v2234_v25  ;;  %v941_v33 = vpop.f32.mrb[45].mxu0  ;;  %2286 = vmatmul.mubr.f32.gmra.mrb[42].mxu1 %v971_v57 }
 0x471   :  { %v972_v6 = vmul.f32 0.16666667, %v941_v33  ;;  %2653 = vmatpush3.bf16.msra.mxu1 %v2774_v17 }
 0x472   :  { %v3228_v15 = vadd.f32 %v973_v32, %v3165_v48  ;;  %2655 = vmatprep.subr.bf16.mxu1 %v2792_v20 }
 0x473   :  { %v3232_v14 = vadd.f32 %v972_v6, %v3169_v27  ;;  %v2237_v50 = vpop.f32.mrb[46].mxu0  ;;  %2288 = vmatprep.mubr.f32.mxu1 %v972_v6 }
 0x474   :  { %v975_v36 = vmul.f32 0.16666667, %v2237_v50  ;;  %v951_v43 = vpop.f32.mrb[47].mxu0  ;;  %2289 = vmatmul.mubr.f32.gmra.mrb[44].mxu1 %v973_v32 }
 0x475   :  { %v974_v37 = vmul.f32 0.16666667, %v951_v43  ;;  %2657 = vmatpush3.bf16.msra.mxu1 %v2792_v20 }
 0x476   :  { %v3236_v42 = vadd.f32 %v975_v36, %v3173_v54  ;;  %2659 = vmatprep.subr.bf16.mxu1 %v2810_v23 }
 0x477   :  { %v3240_v17 = vadd.f32 %v974_v37, %v3177_v18  ;;  %2291 = vmatprep.mubr.f32.mxu1 %v974_v37 }
 0x478   :  { %2292 = vmatmul.mubr.f32.gmra.mrb[46].mxu1 %v975_v36 }
 0x479   :  { %2661 = vmatpush3.bf16.msra.mxu1 %v2810_v23 }
 0x52f   :  { %v2272_v40 = vpop.f32.mrb[32].mxu1 }
 0x530   :  { %v1138_v41 = vmul.f32 0.14285715, %v2272_v40  ;;  %v1058_v44 = vpop.f32.mrb[33].mxu1 }
 0x531   :  { %v1137_v47 = vmul.f32 0.14285715, %v1058_v44 }
 0x532   :  { %v3244_v45 = vadd.f32 %v1138_v41, %v3181_v52 }
 0x533   :  { %v3247_v20 = vadd.f32 %v1137_v47, %v3184_v28  ;;  %v2275_v46 = vpop.f32.mrb[34].mxu1  ;;  %2326 = vmatprep.mubr.f32.mxu0 %v1137_v47 }
 0x534   :  { %v1140_v48 = vmul.f32 0.14285715, %v2275_v46  ;;  %v1068_v27 = vpop.f32.mrb[35].mxu1  ;;  %2327 = vmatmul.mubr.f32.vlgmr.msra.gmra.mrb[48].mxu0 %v1138_v41 }
 0x535   :  { %v1139_v19 = vmul.f32 0.14285715, %v1068_v27 }
 0x536   :  { %v3250_v51 = vadd.f32 %v1140_v48, %v3188_v59 }
 0x537   :  { %v3253_v23 = vadd.f32 %v1139_v19, %v3192_v34  ;;  %v2278_v10 = vpop.f32.mrb[36].mxu1  ;;  %2329 = vmatprep.mubr.f32.mxu0 %v1139_v19 }
 0x538   :  { %v1142_v16 = vmul.f32 0.14285715, %v2278_v10  ;;  %v1078_v54 = vpop.f32.mrb[37].mxu1  ;;  %2330 = vmatmul.mubr.f32.gmra.mrb[50].mxu0 %v1140_v48 }
 0x539   :  { %v1141_v18 = vmul.f32 0.14285715, %v1078_v54 }
 0x53a   :  { %v3256_v9 = vadd.f32 %v1142_v16, %v3196_v63 }
 0x53b   :  { %v3259_v0 = vadd.f32 %v1141_v18, %v3200_v3  ;;  %v2281_v49 = vpop.f32.mrb[38].mxu1  ;;  %2332 = vmatprep.mubr.f32.mxu0 %v1141_v18 }
 0x53c   :  { %v1144_v55 = vmul.f32 0.14285715, %v2281_v49  ;;  %v1088_v52 = vpop.f32.mrb[39].mxu1  ;;  %2333 = vmatmul.mubr.f32.gmra.mrb[52].mxu0 %v1142_v16 }
 0x53d   :  { %v1143_v28 = vmul.f32 0.14285715, %v1088_v52 }
 0x53e   :  { %v3262_v4 = vadd.f32 %v1144_v55, %v3204_v12 }
 0x53f   :  { %v3265_v56 = vadd.f32 %v1143_v28, %v3208_v5  ;;  %v2284_v22 = vpop.f32.mrb[40].mxu1  ;;  %2335 = vmatprep.mubr.f32.mxu0 %v1143_v28 }
 0x540   :  { %v1146_v53 = vmul.f32 0.14285715, %v2284_v22  ;;  %v1098_v59 = vpop.f32.mrb[41].mxu1  ;;  %2336 = vmatmul.mubr.f32.gmra.mrb[54].mxu0 %v1144_v55 }
 0x541   :  { %v1145_v34 = vmul.f32 0.14285715, %v1098_v59 }
 0x542   :  { %v3268_v58 = vadd.f32 %v1146_v53, %v3212_v31 }
 0x543   :  { %v3271_v2 = vadd.f32 %v1145_v34, %v3216_v8  ;;  %v2287_v21 = vpop.f32.mrb[42].mxu1  ;;  %2338 = vmatprep.mubr.f32.mxu0 %v1145_v34 }
 0x544   :  { %v1148_v61 = vmul.f32 0.14285715, %v2287_v21  ;;  %v1108_v63 = vpop.f32.mrb[43].mxu1  ;;  %2339 = vmatmul.mubr.f32.gmra.mrb[56].mxu0 %v1146_v53 }
 0x545   :  { %v1147_v3 = vmul.f32 0.14285715, %v1108_v63 }
 0x546   :  { %v3274_v1 = vadd.f32 %v1148_v61, %v3220_v38 }
 0x547   :  { %v3277_v24 = vadd.f32 %v1147_v3, %v3224_v11  ;;  %v2290_v13 = vpop.f32.mrb[44].mxu1  ;;  %2341 = vmatprep.mubr.f32.mxu0 %v1147_v3 }
 0x548   :  { %v1150_v62 = vmul.f32 0.14285715, %v2290_v13  ;;  %v1118_v12 = vpop.f32.mrb[45].mxu1  ;;  %2342 = vmatmul.mubr.f32.gmra.mrb[58].mxu0 %v1148_v61 }
 0x549   :  { %v1149_v5 = vmul.f32 0.14285715, %v1118_v12 }
 0x54a   :  { %v3280_v26 = vadd.f32 %v1150_v62, %v3228_v15 }
 0x54b   :  { %v3283_v35 = vadd.f32 %v1149_v5, %v3232_v14  ;;  %v2293_v29 = vpop.f32.mrb[46].mxu1  ;;  %2344 = vmatprep.mubr.f32.mxu0 %v1149_v5 }
 0x54c   :  { %v1152_v30 = vmul.f32 0.14285715, %v2293_v29  ;;  %v1128_v31 = vpop.f32.mrb[47].mxu1  ;;  %2345 = vmatmul.mubr.f32.gmra.mrb[60].mxu0 %v1150_v62 }
 0x54d   :  { %v1151_v8 = vmul.f32 0.14285715, %v1128_v31 }
 0x54e   :  { %v3286_v39 = vadd.f32 %v1152_v30, %v3236_v42 }
 0x54f   :  { %v3289_v57 = vadd.f32 %v1151_v8, %v3240_v17  ;;  %2347 = vmatprep.mubr.f32.mxu0 %v1151_v8 }
 0x550   :  { %2348 = vmatmul.mubr.f32.gmra.mrb[62].mxu0 %v1152_v30 }
 0x607   :  { %v2328_v60 = vpop.f32.mrb[48].mxu0 }
 0x608   :  { %v1315_v7 = vmul.f32 0.125, %v2328_v60  ;;  %v1235_v38 = vpop.f32.mrb[49].mxu0 }
 0x609   :  { %v1314_v11 = vmul.f32 0.125, %v1235_v38 }
 0x60a   :  { %v3292_v25 = vadd.f32 %v1315_v7, %v3244_v45 }
 0x60b   :  { %v3295_v32 = vadd.f32 %v1314_v11, %v3247_v20  ;;  %v2331_v33 = vpop.f32.mrb[50].mxu0  ;;  %2382 = vmatprep.mubr.f32.mxu1 %v1314_v11 }
 0x60c   :  { %v1317_v6 = vmul.f32 0.125, %v2331_v33  ;;  %v1245_v15 = vpop.f32.mrb[51].mxu0  ;;  %2383 = vmatmul.mubr.f32.vlgmr.msra.gmra.mrb[48].mxu1 %v1315_v7 }
 0x60d   :  { %v1316_v14 = vmul.f32 0.125, %v1245_v15 }
 0x60e   :  { %v3298_v50 = vadd.f32 %v1317_v6, %v3250_v51 }
 0x60f   :  { %v3301_v36 = vadd.f32 %v1316_v14, %v3253_v23  ;;  %v2334_v43 = vpop.f32.mrb[52].mxu0  ;;  %2385 = vmatprep.mubr.f32.mxu1 %v1316_v14 }
 0x610   :  { %v1319_v37 = vmul.f32 0.125, %v2334_v43  ;;  %v1255_v42 = vpop.f32.mrb[53].mxu0  ;;  %2386 = vmatmul.mubr.f32.gmra.mrb[50].mxu1 %v1317_v6 }
 0x611   :  { %v1318_v17 = vmul.f32 0.125, %v1255_v42 }
 0x612   :  { %v3304_v40 = vadd.f32 %v1319_v37, %v3256_v9 }
 0x613   :  { %v3307_v41 = vadd.f32 %v1318_v17, %v3259_v0  ;;  %v2337_v44 = vpop.f32.mrb[54].mxu0  ;;  %2388 = vmatprep.mubr.f32.mxu1 %v1318_v17 }
 0x614   :  { %v1321_v47 = vmul.f32 0.125, %v2337_v44  ;;  %v1265_v45 = vpop.f32.mrb[55].mxu0  ;;  %2389 = vmatmul.mubr.f32.gmra.mrb[52].mxu1 %v1319_v37 }
 0x615   :  { %v1320_v20 = vmul.f32 0.125, %v1265_v45 }
 0x616   :  { %v3310_v46 = vadd.f32 %v1321_v47, %v3262_v4 }
 0x617   :  { %v3313_v48 = vadd.f32 %v1320_v20, %v3265_v56  ;;  %v2340_v27 = vpop.f32.mrb[56].mxu0  ;;  %2391 = vmatprep.mubr.f32.mxu1 %v1320_v20 }
 0x618   :  { %v1323_v19 = vmul.f32 0.125, %v2340_v27  ;;  %v1275_v51 = vpop.f32.mrb[57].mxu0  ;;  %2392 = vmatmul.mubr.f32.gmra.mrb[54].mxu1 %v1321_v47 }
 0x619   :  { %v1322_v23 = vmul.f32 0.125, %v1275_v51 }
 0x61a   :  { %v3316_v10 = vadd.f32 %v1323_v19, %v3268_v58 }
 0x61b   :  { %v3319_v16 = vadd.f32 %v1322_v23, %v3271_v2  ;;  %v2343_v54 = vpop.f32.mrb[58].mxu0  ;;  %2394 = vmatprep.mubr.f32.mxu1 %v1322_v23 }
 0x61c   :  { %v1325_v18 = vmul.f32 0.125, %v2343_v54  ;;  %v1285_v9 = vpop.f32.mrb[59].mxu0  ;;  %2395 = vmatmul.mubr.f32.gmra.mrb[56].mxu1 %v1323_v19 }
 0x61d   :  { %v1324_v0 = vmul.f32 0.125, %v1285_v9 }
 0x61e   :  { %v3322_v49 = vadd.f32 %v1325_v18, %v3274_v1 }
 0x61f   :  { %v3325_v55 = vadd.f32 %v1324_v0, %v3277_v24  ;;  %v2346_v52 = vpop.f32.mrb[60].mxu0  ;;  %2397 = vmatprep.mubr.f32.mxu1 %v1324_v0 }
 0x620   :  { %v1327_v28 = vmul.f32 0.125, %v2346_v52  ;;  %v1295_v4 = vpop.f32.mrb[61].mxu0  ;;  %2398 = vmatmul.mubr.f32.gmra.mrb[58].mxu1 %v1325_v18 }
 0x621   :  { %v1326_v56 = vmul.f32 0.125, %v1295_v4 }
 0x622   :  { %v3328_v22 = vadd.f32 %v1327_v28, %v3280_v26 }
 0x623   :  { %v3331_v53 = vadd.f32 %v1326_v56, %v3283_v35  ;;  %v2349_v59 = vpop.f32.mrb[62].mxu0  ;;  %2400 = vmatprep.mubr.f32.mxu1 %v1326_v56 }
 0x624   :  { %v1329_v34 = vmul.f32 0.125, %v2349_v59  ;;  %v1305_v58 = vpop.f32.mrb[63].mxu0  ;;  %2401 = vmatmul.mubr.f32.gmra.mrb[60].mxu1 %v1327_v28 }
 0x625   :  { %v1328_v2 = vmul.f32 0.125, %v1305_v58 }
 0x626   :  { %v3334_v21 = vadd.f32 %v1329_v34, %v3286_v39 }
 0x627   :  { %v3337_v61 = vadd.f32 %v1328_v2, %v3289_v57  ;;  %2403 = vmatprep.mubr.f32.mxu1 %v1328_v2 }
 0x628   :  { %2404 = vmatmul.mubr.f32.gmra.mrb[62].mxu1 %v1329_v34 }
 0x6df   :  { %v2384_v63 = vpop.f32.mrb[48].mxu1 }
 0x6e0   :  { %v1492_v3 = vmul.f32 0.11111111, %v2384_v63  ;;  %v1412_v1 = vpop.f32.mrb[49].mxu1 }
 0x6e1   :  { %v1491_v24 = vmul.f32 0.11111111, %v1412_v1 }
 0x6e2   :  { %v1508_v13 = vadd.f32 %v1492_v3, %v3292_v25 }
 0x6e3   :  { %v1507_v62 = vadd.f32 %v1491_v24, %v3295_v32  ;;  %v2387_v12 = vpop.f32.mrb[50].mxu1 }
 0x6e4   :  { %v1494_v5 = vmul.f32 0.11111111, %v2387_v12  ;;  %v1422_v26 = vpop.f32.mrb[51].mxu1 }
 0x6e5   :  { %v1658_v35 = vpack.c.bf16 %v1508_v13, %v1507_v62  ;;  %v1493_v29 = vmul.f32 0.11111111, %v1422_v26 }
 0x6e6   :  { %v1510_v30 = vadd.f32 %v1494_v5, %v3298_v50 }
 0x6e7   :  { %1659 = vst [vmem:[%s3380_s1] sm:$0xff] %v1658_v35   ;;  %v1509_v31 = vadd.f32 %v1493_v29, %v3301_v36  ;;  %v2390_v8 = vpop.f32.mrb[52].mxu1 }
 0x6e8   :  { %v1496_v39 = vmul.f32 0.11111111, %v2390_v8  ;;  %v1432_v57 = vpop.f32.mrb[53].mxu1 }
 0x6e9   :  { %v1663_v60 = vpack.c.bf16 %v1510_v30, %v1509_v31  ;;  %v1495_v7 = vmul.f32 0.11111111, %v1432_v57 }
 0x6ea   :  { %v1512_v38 = vadd.f32 %v1496_v39, %v3304_v40 }
 0x6eb   :  { %1695 = vst [vmem:[%s3380_s1 + $0x8] sm:$0xff] %v1663_v60   ;;  %v1511_v11 = vadd.f32 %v1495_v7, %v3307_v41  ;;  %v2393_v25 = vpop.f32.mrb[54].mxu1 }
 0x6ec   :  { %v1498_v32 = vmul.f32 0.11111111, %v2393_v25  ;;  %v1442_v33 = vpop.f32.mrb[55].mxu1 }
 0x6ed   :  { %v1668_v6 = vpack.c.bf16 %v1512_v38, %v1511_v11  ;;  %v1497_v15 = vmul.f32 0.11111111, %v1442_v33 }
 0x6ee   :  { %v1514_v14 = vadd.f32 %v1498_v32, %v3310_v46 }
 0x6ef   :  { %1696 = vst [vmem:[%s3380_s1 + $0x10] sm:$0xff] %v1668_v6   ;;  %v1513_v50 = vadd.f32 %v1497_v15, %v3313_v48  ;;  %v2396_v36 = vpop.f32.mrb[56].mxu1 }
 0x6f0   :  { %v1500_v43 = vmul.f32 0.11111111, %v2396_v36  ;;  %v1452_v37 = vpop.f32.mrb[57].mxu1 }
 0x6f1   :  { %v1673_v42 = vpack.c.bf16 %v1514_v14, %v1513_v50  ;;  %v1499_v17 = vmul.f32 0.11111111, %v1452_v37 }
 0x6f2   :  { %v1516_v40 = vadd.f32 %v1500_v43, %v3316_v10 }
 0x6f3   :  { %1697 = vst [vmem:[%s3380_s1 + $0x18] sm:$0xff] %v1673_v42   ;;  %v1515_v41 = vadd.f32 %v1499_v17, %v3319_v16  ;;  %v2399_v44 = vpop.f32.mrb[58].mxu1 }
 0x6f4   :  { %v1502_v47 = vmul.f32 0.11111111, %v2399_v44  ;;  %v1462_v45 = vpop.f32.mrb[59].mxu1 }
 0x6f5   :  { %v1678_v20 = vpack.c.bf16 %v1516_v40, %v1515_v41  ;;  %v1501_v46 = vmul.f32 0.11111111, %v1462_v45 }
 0x6f6   :  { %v1518_v48 = vadd.f32 %v1502_v47, %v3322_v49 }
 0x6f7   :  { %1698 = vst [vmem:[%s3380_s1 + $0x20] sm:$0xff] %v1678_v20   ;;  %v1517_v27 = vadd.f32 %v1501_v46, %v3325_v55  ;;  %v2402_v19 = vpop.f32.mrb[60].mxu1 }
 0x6f8   :  { %v1504_v51 = vmul.f32 0.11111111, %v2402_v19  ;;  %v1472_v23 = vpop.f32.mrb[61].mxu1 }
 0x6f9   :  { %v1683_v10 = vpack.c.bf16 %v1518_v48, %v1517_v27  ;;  %v1503_v54 = vmul.f32 0.11111111, %v1472_v23 }
 0x6fa   :  { %v1520_v16 = vadd.f32 %v1504_v51, %v3328_v22 }
 0x6fb   :  { %1699 = vst [vmem:[%s3380_s1 + $0x28] sm:$0xff] %v1683_v10   ;;  %v1519_v18 = vadd.f32 %v1503_v54, %v3331_v53  ;;  %v2405_v9 = vpop.f32.mrb[62].mxu1 }
 0x6fc   :  { %v1506_v0 = vmul.f32 0.11111111, %v2405_v9  ;;  %v1482_v49 = vpop.f32.mrb[63].mxu1 }
 0x6fd   :  { %v1688_v52 = vpack.c.bf16 %v1520_v16, %v1519_v18  ;;  %v1505_v28 = vmul.f32 0.11111111, %v1482_v49 }
 0x6fe   :  { %v1522_v55 = vadd.f32 %v1506_v0, %v3334_v21 }
 0x6ff   :  { %1700 = vst [vmem:[%s3380_s1 + $0x30] sm:$0xff] %v1688_v52   ;;  %v1521_v4 = vadd.f32 %v1505_v28, %v3337_v61 }
 0x701   :  { %v1693_v56 = vpack.c.bf16 %v1522_v55, %v1521_v4 }
 0x703   :  { %1701 = vst [vmem:[%s3380_s1 + $0x38] sm:$0xff] %v1693_v56  }

</bundles_post_ra>
